<compile_context>
chip_gen: v5e
topology: v5e:2x2
jax: 0.10.0
libtpu: 0.0.40
codegen_flags: <defaults>
</compile_context>

<pallas_src>
import numpy as np
import jax
import jax.numpy as jnp
from jax.experimental import pallas as pl
from jax.experimental.pallas import tpu as pltpu


# ----------------------------- mask construction -----------------------------
def make_mask(in_size, out_size, K, out_factor, mask_type):
    """Reproduces MaskedMLPforSplineFlow.__init__ mask (PyTorch (out, in) layout)."""
    assert mask_type in ("A", "B")
    ratio = K / out_factor
    out_w = int(ratio * out_size)
    in_w = int(ratio * in_size) if mask_type == "B" else int(in_size / 2)
    mask = np.ones((out_size, in_size), dtype=np.float32)
    mask[:out_w, in_w:] = 0.0
    return mask


# --------------------------------- kernel ------------------------------------
def masked_mlp_kernel(x_ref, w1_ref, b1_ref, w2_ref, b2_ref, w3_ref, b3_ref, o_ref):
    # Layer 0 (maskType 'A', mask pre-folded into w1) + ReLU
    h = jnp.dot(x_ref[...], w1_ref[...], preferred_element_type=jnp.float32)
    h = jnp.maximum(h + b1_ref[...], 0.0)

    # Layer 1 (maskType 'B') + ReLU
    h = jnp.dot(h.astype(w2_ref.dtype), w2_ref[...], preferred_element_type=jnp.float32)
    h = jnp.maximum(h + b2_ref[...], 0.0)

    # Layer 2 (maskType 'B'), no activation; bias-add-only epilogue keeps the
    # store slot off the critical path (v5e has a single vst slot).
    h = jnp.dot(h.astype(w3_ref.dtype), w3_ref[...], preferred_element_type=jnp.float32)
    o_ref[...] = (h + b3_ref[...]).astype(o_ref.dtype)


def masked_mlp_forward(x2d, params, *, tile_b=128):
    """x2d: (B, in0) f32.
    params: list of (W (in,out) bf16 with mask pre-folded, b (1,out) f32)."""
    B, in0 = x2d.shape
    out_dim = params[-1][0].shape[1]
    compute_dtype = params[0][0].dtype

    # Pad batch to a multiple of the tile (grid must be integral).
    n_tiles = int(pl.cdiv(B, tile_b))
    B_pad = n_tiles * tile_b
    if B_pad != B:
        x2d = jnp.pad(x2d, ((0, B_pad - B), (0, 0)))
    x2d = x2d.astype(compute_dtype)

    def resident(a):  # constant block index -> fetched once, stays VMEM-resident
        nd = a.ndim
        return pl.BlockSpec(a.shape, lambda i, _nd=nd: (0,) * _nd)

    flat_args = [x2d]
    in_specs = [pl.BlockSpec((tile_b, in0), lambda i: (i, 0))]
    for w, b in params:
        flat_args += [w, b]
        in_specs += [resident(w), resident(b)]

    out = pl.pallas_call(
        masked_mlp_kernel,
        out_shape=jax.ShapeDtypeStruct((B_pad, out_dim), jnp.float32),
        grid=(n_tiles,),
        in_specs=in_specs,
        out_specs=pl.BlockSpec((tile_b, out_dim), lambda i: (i, 0)),
        compiler_params=pltpu.CompilerParams(
            dimension_semantics=("parallel",),      # megacore sharding on v7x
            vmem_limit_bytes=32 * 1024 * 1024,      # fits easily within v7x's 64 MiB
        ),
    )(*flat_args)
    return out[:B]


# ------------------------------ pure-JAX reference ---------------------------
def ref_forward(x2d, params):
    """Mirrors the kernel's bf16-compute / f32-accumulate math."""
    h = x2d.astype(params[0][0].dtype)
    n = len(params)
    for i, (w, b) in enumerate(params):
        h = jnp.dot(h, w, preferred_element_type=jnp.float32) + b
        if i < n - 1:  # ReLU on all but the last layer
            h = jnp.maximum(h, 0.0).astype(w.dtype)
    return h


# --------------------------------- driver ------------------------------------
if __name__ == "__main__":
    # Module configuration (small, TPU-friendly sizes).
    dataShape = (1, 8, 8)            # dataShape[0] must be 1 for the final reshape
    hiddenDims = [128, 128]
    K = 2
    outFactor = 4
    B = 256                          # batch; tiled into TILE_B-row grid steps
    TILE_B = 128

    prod_ds = int(np.prod(dataShape))            # 64
    in0 = 2 * prod_ds                            # 128
    layer_sizes = [
        (in0, hiddenDims[0], "A"),
        (hiddenDims[0], hiddenDims[1], "B"),
        (hiddenDims[1], outFactor * prod_ds, "B"),
    ]

    key = jax.random.PRNGKey(0)
    params = []
    for (fan_in, fan_out, mtype) in layer_sizes:
        key, kw, kb = jax.random.split(key, 3)
        bound = 1.0 / np.sqrt(fan_in)            # nn.Linear default init range
        w_pt = jax.random.uniform(kw, (fan_out, fan_in), jnp.float32, -bound, bound)
        b_pt = jax.random.uniform(kb, (fan_out,), jnp.float32, -bound, bound)
        mask_pt = jnp.asarray(make_mask(fan_in, fan_out, K, outFactor, mtype))
        # Pre-fold the static mask into the weight, transpose to (in, out), cast bf16.
        w_folded = (w_pt * mask_pt).T.astype(jnp.bfloat16)
        params.append((w_folded, b_pt.reshape(1, fan_out).astype(jnp.float32)))

    # Example input, shaped like the flow's NCHW-style tensor (B, 2, C, H, W).
    key, kx = jax.random.split(key)
    x = jax.random.normal(kx, (B, 2, *dataShape), jnp.float32)

    # Glue: flatten (as in MaskedMLPforSplineFlow.forward's x.reshape(B, -1)).
    x2d = x.reshape(B, -1)

    out2d = masked_mlp_forward(x2d, params, tile_b=TILE_B)
    out2d = jax.block_until_ready(out2d)

    # Glue: final reshape=[outFactor, *dataShape[1:]]  ->  (B, 4, 8, 8)
    out = out2d.reshape(B, outFactor, *dataShape[1:])

    # Correctness check against a pure-JAX reference of the same math (bf16 compute,
    # f32 accumulate), with tolerances appropriate for bf16.
    ref = ref_forward(x2d, params).reshape(B, outFactor, *dataShape[1:])
    np.testing.assert_allclose(np.asarray(out), np.asarray(ref), rtol=1e-2, atol=1e-2)

    print("KERNEL_OK")
</pallas_src>

<mosaic_0001>
module attributes {stable_mosaic.version = 11 : i64} {
  func.func @masked_mlp_kernel(%arg0: i32, %arg1: memref<128x128xbf16, #tpu.memory_space<vmem>>, %arg2: memref<128x128xbf16, #tpu.memory_space<vmem>>, %arg3: memref<1x128xf32, #tpu.memory_space<vmem>>, %arg4: memref<128x128xbf16, #tpu.memory_space<vmem>>, %arg5: memref<1x128xf32, #tpu.memory_space<vmem>>, %arg6: memref<128x256xbf16, #tpu.memory_space<vmem>>, %arg7: memref<1x256xf32, #tpu.memory_space<vmem>>, %arg8: memref<128x256xf32, #tpu.memory_space<vmem>>) attributes {dimension_semantics = [#tpu.dimension_semantics<parallel>], iteration_bounds = array<i64: 2>, scalar_prefetch = 0 : i64, scratch_operands = 0 : i64, tpu.core_type = #tpu.core_type<tc>, window_params = [{transform_indices = @transform_0, window_bounds = array<i64: 128, 128>}, {pipeline_mode = #tpu.pipeline_mode<synchronous>, transform_indices = @transform_1, window_bounds = array<i64: 128, 128>}, {pipeline_mode = #tpu.pipeline_mode<synchronous>, transform_indices = @transform_2, window_bounds = array<i64: 1, 128>}, {pipeline_mode = #tpu.pipeline_mode<synchronous>, transform_indices = @transform_3, window_bounds = array<i64: 128, 128>}, {pipeline_mode = #tpu.pipeline_mode<synchronous>, transform_indices = @transform_4, window_bounds = array<i64: 1, 128>}, {pipeline_mode = #tpu.pipeline_mode<synchronous>, transform_indices = @transform_5, window_bounds = array<i64: 128, 256>}, {pipeline_mode = #tpu.pipeline_mode<synchronous>, transform_indices = @transform_6, window_bounds = array<i64: 1, 256>}, {transform_indices = @transform_7, window_bounds = array<i64: 128, 256>}]} {
    %c0 = arith.constant 0 : index
    %c0_0 = arith.constant 0 : index
    %0 = vector.load %arg1[%c0, %c0_0] : memref<128x128xbf16, #tpu.memory_space<vmem>>, vector<128x128xbf16>
    %c0_1 = arith.constant 0 : index
    %c0_2 = arith.constant 0 : index
    %1 = vector.load %arg2[%c0_1, %c0_2] : memref<128x128xbf16, #tpu.memory_space<vmem>>, vector<128x128xbf16>
    %cst = arith.constant dense<0.000000e+00> : vector<128x128xf32>
    %2 = tpu.matmul %0, %1, %cst {dimension_numbers = #tpu.dot_dimension_numbers<[1], [0], [0], [1], [0, 0, 1, 1], [], []>} : vector<128x128xbf16>, vector<128x128xbf16>, vector<128x128xf32> -> vector<128x128xf32>
    %c0_3 = arith.constant 0 : index
    %c0_4 = arith.constant 0 : index
    %3 = vector.load %arg3[%c0_3, %c0_4] : memref<1x128xf32, #tpu.memory_space<vmem>>, vector<1x128xf32>
    %4 = vector.broadcast %3 : vector<1x128xf32> to vector<128x128xf32>
    %5 = arith.addf %2, %4 : vector<128x128xf32>
    %cst_5 = arith.constant 0.000000e+00 : f32
    %6 = vector.broadcast %cst_5 : f32 to vector<128x128xf32>
    %7 = arith.maximumf %5, %6 : vector<128x128xf32>
    %8 = arith.truncf %7 : vector<128x128xf32> to vector<128x128xbf16>
    %c0_6 = arith.constant 0 : index
    %c0_7 = arith.constant 0 : index
    %9 = vector.load %arg4[%c0_6, %c0_7] : memref<128x128xbf16, #tpu.memory_space<vmem>>, vector<128x128xbf16>
    %cst_8 = arith.constant dense<0.000000e+00> : vector<128x128xf32>
    %10 = tpu.matmul %8, %9, %cst_8 {dimension_numbers = #tpu.dot_dimension_numbers<[1], [0], [0], [1], [0, 0, 1, 1], [], []>} : vector<128x128xbf16>, vector<128x128xbf16>, vector<128x128xf32> -> vector<128x128xf32>
    %c0_9 = arith.constant 0 : index
    %c0_10 = arith.constant 0 : index
    %11 = vector.load %arg5[%c0_9, %c0_10] : memref<1x128xf32, #tpu.memory_space<vmem>>, vector<1x128xf32>
    %12 = vector.broadcast %11 : vector<1x128xf32> to vector<128x128xf32>
    %13 = arith.addf %10, %12 : vector<128x128xf32>
    %cst_11 = arith.constant 0.000000e+00 : f32
    %14 = vector.broadcast %cst_11 : f32 to vector<128x128xf32>
    %15 = arith.maximumf %13, %14 : vector<128x128xf32>
    %16 = arith.truncf %15 : vector<128x128xf32> to vector<128x128xbf16>
    %c0_12 = arith.constant 0 : index
    %c0_13 = arith.constant 0 : index
    %17 = vector.load %arg6[%c0_12, %c0_13] : memref<128x256xbf16, #tpu.memory_space<vmem>>, vector<128x256xbf16>
    %cst_14 = arith.constant dense<0.000000e+00> : vector<128x256xf32>
    %18 = tpu.matmul %16, %17, %cst_14 {dimension_numbers = #tpu.dot_dimension_numbers<[1], [0], [0], [1], [0, 0, 1, 1], [], []>} : vector<128x128xbf16>, vector<128x256xbf16>, vector<128x256xf32> -> vector<128x256xf32>
    %c0_15 = arith.constant 0 : index
    %c0_16 = arith.constant 0 : index
    %19 = vector.load %arg7[%c0_15, %c0_16] : memref<1x256xf32, #tpu.memory_space<vmem>>, vector<1x256xf32>
    %20 = vector.broadcast %19 : vector<1x256xf32> to vector<128x256xf32>
    %21 = arith.addf %18, %20 : vector<128x256xf32>
    %c0_17 = arith.constant 0 : index
    %c0_18 = arith.constant 0 : index
    %22 = vector.load %arg8[%c0_17, %c0_18] : memref<128x256xf32, #tpu.memory_space<vmem>>, vector<128x256xf32>
    tpu.vector_store %arg8[%c0_17, %c0_18], %21 {strides = array<i32>} : memref<128x256xf32, #tpu.memory_space<vmem>>, vector<128x256xf32>,
    return
  }
  func.func @transform_0(%arg0: i32) -> (i32, i32) {
    %c0_i32 = arith.constant 0 : i32
    %c0_i32_0 = arith.constant 0 : i32
    return %arg0, %c0_i32 : i32, i32
  }
  func.func @transform_1(%arg0: i32) -> (i32, i32) {
    %c0_i32 = arith.constant 0 : i32
    %c0_i32_0 = arith.constant 0 : i32
    %c0_i32_1 = arith.constant 0 : i32
    return %c0_i32, %c0_i32_0 : i32, i32
  }
  func.func @transform_2(%arg0: i32) -> (i32, i32) {
    %c0_i32 = arith.constant 0 : i32
    %c0_i32_0 = arith.constant 0 : i32
    %c0_i32_1 = arith.constant 0 : i32
    return %c0_i32, %c0_i32_0 : i32, i32
  }
  func.func @transform_3(%arg0: i32) -> (i32, i32) {
    %c0_i32 = arith.constant 0 : i32
    %c0_i32_0 = arith.constant 0 : i32
    %c0_i32_1 = arith.constant 0 : i32
    return %c0_i32, %c0_i32_0 : i32, i32
  }
  func.func @transform_4(%arg0: i32) -> (i32, i32) {
    %c0_i32 = arith.constant 0 : i32
    %c0_i32_0 = arith.constant 0 : i32
    %c0_i32_1 = arith.constant 0 : i32
    return %c0_i32, %c0_i32_0 : i32, i32
  }
  func.func @transform_5(%arg0: i32) -> (i32, i32) {
    %c0_i32 = arith.constant 0 : i32
    %c0_i32_0 = arith.constant 0 : i32
    %c0_i32_1 = arith.constant 0 : i32
    return %c0_i32, %c0_i32_0 : i32, i32
  }
  func.func @transform_6(%arg0: i32) -> (i32, i32) {
    %c0_i32 = arith.constant 0 : i32
    %c0_i32_0 = arith.constant 0 : i32
    %c0_i32_1 = arith.constant 0 : i32
    return %c0_i32, %c0_i32_0 : i32, i32
  }
  func.func @transform_7(%arg0: i32) -> (i32, i32) {
    %c0_i32 = arith.constant 0 : i32
    %c0_i32_0 = arith.constant 0 : i32
    return %arg0, %c0_i32 : i32, i32
  }
}

</mosaic_0001>

<bundles_post_ra>
// kernel: tpu_custom_call.1
= control target key start
LH: loop header
LB: loop body
LE: loop exit
PB: predicated region body
PF: predicated region fallthrough
CT: control target
= control target key end

     0   :  { %s1964_s0 = inlined_call_operand.hbm [shape: bf16[256,128], index: 0, kind: input, shape index: {}]   ;;  %s1965_s1 = inlined_call_operand.hbm [shape: bf16[128,128], index: 1, kind: input, shape index: {}]   ;;  %s1966_s2 = inlined_call_operand.vmem [shape: f32[1,128], index: 2, kind: input, shape index: {}]   ;;  %s1967_s3 = inlined_call_operand.hbm [shape: bf16[128,128], index: 3, kind: input, shape index: {}]   ;;  %s1968_s4 = inlined_call_operand.hbm [shape: f32[1,128], index: 4, kind: input, shape index: {}]   ;;  %s1969_s5 = inlined_call_operand.hbm [shape: bf16[128,256], index: 5, kind: input, shape index: {}]   ;;  %s1970_s6 = inlined_call_operand.vmem [shape: f32[1,256], index: 6, kind: input, shape index: {}]   ;;  %s1971_s7 = inlined_call_operand.hbm [shape: f32[256,256], index: 7, kind: output, shape index: {}]  }
   0x1   :  { %1974 = sst [smem:[#allocation16_spill]] %s1965_s1 }
   0x2   :  { %12 = vsyncpa [#allocation3], 0 }
   0x3   :  { %14 = vsyncpa [#allocation3 + $0x1], 0 }
   0x4   :  { %15 = vsyncpa [#allocation6], 0 }
   0x5   :  { %16 = vsyncpa [#allocation9], 0 }
   0x6   :  { %17 = vsyncpa [#allocation4], 0 }
   0x7   :  { %19 = vsyncpa [#allocation4 + $0x1], 0  ;;  %s1668_s24 = smov 0   ;;  %s1670_s25 = smov 0  }
   0x8   :  { %s1672_s26 = smov 0   ;;  %s1674_s27 = smov 0  }
   0x9 LB: > { %s1689_s28 = sadd.s32 4294967295, %s1616_s27   ;;  %s1071_s29 = sadd.s32 4294967294, %s1616_s27   ;;  %s1616_s27 = sphi %s1674_s27, %s1988_s27   ;;  %s1612_s26 = sphi %s1672_s26, %s1987_s26   ;;  %s1608_s25 = sphi %s1670_s25, %s1986_s25   ;;  %s1604_s24 = sphi %s1668_s24, %s1985_s24  }
   0xa   : > { %p45_p0 = scmp.ne.s32.totalorder %s1608_s25, %s1604_s24  ;;  %p46_p1 = scmp.eq.s32.totalorder %s1689_s28, 0 }
   0xb   : > { %p195_p2 = scmp.eq.s32.totalorder %s1689_s28, 1  ;;  %p201_p3 = scmp.eq.s32.totalorder %s1071_s29, 1 }
   0xc   : > { %p1698_p4 = por %p46_p1, %p45_p0  ;;  %p1072_p5 = scmp.ge.s32.totalorder %s1616_s27, 1 }
   0xd   : > { %p1703_p6 = por %p201_p3, %p45_p0  ;;  %p208_p7 = scmp.lt.s32.totalorder %s1616_s27, 3 }
   0xe   : > { %s1977_s1 = sld [smem:[#allocation16_spill]]  ;;  %s1618_s13 = smov [#allocation5]  }
   0xf   : > { %p1711_p8 = pnand %p1072_p5, %p208_p7  ;;  %s221_s14 = sshll.u32 %s1618_s13, 4  ;;  %s222_s14 = int_to_ptr.vmem [resolvable:$true] %s221_s14 }
  0x10   : > { %s251_s18 = sshll.u32 %s1968_s4, 4  ;;  %s1972_s19 = smov 64   ;;  %s252_s18 = int_to_ptr.hbm [resolvable:$true] %s251_s18 }
  0x11   : > { %p1317_p9 = pneg %p1711_p8  ;;  %s1973_s20 = smov 4  }
  0x12   : > { %s1621_s21 = smov [#allocation8]   ;;  %s236_s9 = sshll.u32 %s1967_s3, 4  ;;  %s237_s9 = int_to_ptr.hbm [resolvable:$true] %s236_s9 }
  0x13   : > { %p1719_p10 = pnand %p1317_p9, %p46_p1  ;;  %s253_s22 = sshll.u32 %s1621_s21, 4  ;;  %s254_s22 = int_to_ptr.vmem [resolvable:$true] %s253_s22 }
  0x14   : > { %s219_s11 = sshll.u32 %s1977_s1, 4  ;;  %s262_s16 = sshll.u32 %s1969_s5, 4  ;;  %s220_s11 = int_to_ptr.hbm [resolvable:$true] %s219_s11  ;;  %s263_s16 = int_to_ptr.hbm [resolvable:$true] %s262_s16 }
  0x15   : > { %1320 = dma.hbm_to_vmem [thread:$0]  (!%p1719_p10), %s220_s11, 1024, %s222_s14, [#allocation6], %s1972_s19, %s1972_s19, %s1973_s20  }
  0x16   : > { %1326 = dma.hbm_to_vmem [thread:$0]  (!%p1719_p10), %s252_s18, 16, %s254_s22, [#allocation9]  }
  0x17   : > { %s1622_s11 = smov [#allocation7]   ;;  %s1623_s17 = smov [#allocation10]  }
  0x18   : > { %s238_s14 = sshll.u32 %s1622_s11, 4  ;;  %s264_s18 = sshll.u32 %s1623_s17, 4  ;;  %s239_s14 = int_to_ptr.vmem [resolvable:$true] %s238_s14  ;;  %s265_s18 = int_to_ptr.vmem [resolvable:$true] %s264_s18 }
  0x19   : > { %1323 = dma.hbm_to_vmem [thread:$0]  (!%p1719_p10), %s237_s9, 1024, %s239_s14, [#allocation6], %s1972_s19, %s1972_s19, %s1973_s20  }
  0x1a   : > { %s1624_s21 = smov 128   ;;  %s1625_s22 = smov 8  }
  0x1b   : > { %1329 = dma.hbm_to_vmem [thread:$0]  (!%p1719_p10), %s263_s16, 2048, %s265_s18, [#allocation9], %s1624_s21, %s1624_s21, %s1625_s22  }
  0x1c   : > { %s1748_s23 = sadd.s32 1, %s1616_s27   ;;  %s32_s10 = sadd.s32 1, %s1612_s26 }
  0x1d   : > { %s29_s29 = ssub.s32 %s1616_s27, %s1748_s23  ;;  %p39_p13 = scmp.ne.s32.totalorder %s1612_s26, %s1608_s25 }
  0x1e   : > { %p30_p12 = scmp.eq.s32.totalorder %s29_s29, 0  ;;  %p40_p0 = scmp.eq.s32.totalorder %s1616_s27, 0 }
  0x1f   : > { %p1761_p5 = por %p195_p2, %p39_p13  ;;  %p1342_p7 = scmp.lt.s32.totalorder %s1616_s27, 2 }
  0x20   : > { %s1757_s13 = scalar_select %p30_p12, %s1612_s26, %s32_s10  }
  0x21   : > { %p41_p3 = por %p40_p0, %p39_p13  ;;  %s281_s11 = sand.u32 1, %s1612_s26  }
  0x22   : > { %s1078_s15 = sshll.u32 %s281_s11, 6  ;;  %s1254_s16 = sshll.u32 %s1616_s27, 6 }
  0x23   : > { %s290_s18 = scalar_lea.hbm %s1964_s0, %s1254_s16  ;;  %s285_s21 = scalar_lea.vmem [#allocation2], %s1078_s15 }
  0x24   : > { %s293_s22 = sshll.u32 %s285_s21, 4  ;;  %s291_s29 = sshll.u32 %s290_s18, 4  ;;  %s294_s22 = int_to_ptr.vmem [resolvable:$true] %s293_s22  ;;  %s292_s29 = int_to_ptr.hbm [resolvable:$true] %s291_s29 }
  0x25   : > { %p1771_p9 = pnand %p1342_p7, %p41_p3  ;;  %s282_s19 = scalar_lea.sflag [#allocation3], %s281_s11 }
  0x26   : > { %s1512_s20 = sshra.s32 %s292_s29, 4  ;;  %s1519_s14 = scalar_lea.hbm %s1964_s0, 128  ;;  %s1513_s20 = int_to_ptr.hbm [resolvable:$true] %s1512_s20 }
  0x27   : > { %s1514_s1 = scalar_lea.hbm %s1513_s20, 64  ;;  %p1516_p10 = pneg %p1771_p9 }
  0x28   : > { %p1515_p2 = scmp.ne.s32.totalorder %s1513_s20, %s1514_s1  ;;  %p1520_p0 = scmp.lt.s32.totalorder %s1513_s20, %s1964_s0 }
  0x29   : > { %p1521_p3 = scmp.lt.s32.totalorder %s1519_s14, %s1514_s1 }
  0x2a   : > { %p1517_p12 = pnand %p1516_p10, %p1515_p2 }
  0x2b   : > { %p1522_p7 = por %p1521_p3, %p1520_p0 }
  0x2c   : > { %p1518_p13 = pneg %p1517_p12 }
  0x2e   : > { %p1523_p11 = pnand %p1522_p7, %p1518_p13 }
  0x30   : > { %1526 = shalt.err (!%p1523_p11)
}
  0x31   : > { %s1982_s11 = smov 4   ;;  %s1983_s21 = smov 64  }
  0x32   : > { %1333 = dma.hbm_to_vmem [thread:$0]  (!%p1771_p9), %s292_s29, 1024, %s294_s22, %s282_s19, %s1983_s21, %s1983_s21, %s1982_s11  }
  0x33   : > { %305 = sbr.rel (%p1711_p8) target bundleno = 632 (0x278), region = 48  ;;  %s1791_s16 = sand.u32 (!%p1711_p8), 1, %s1608_s25  }
  0x34   : > { %s1082_s20 = sshll.u32 (!%p1711_p8), %s1791_s16, 6  ;;  %s308_s1 = scalar_lea.sflag (!%p1711_p8), [#allocation3], %s1791_s16 }
  0x35   : > { %s1795_s15 = scalar_lea.vmem (!%p1711_p8), [#allocation2], %s1082_s20 }
  0x38   : > { %1587 = dma.done.wait (%p1698_p4), %s308_s1, 1024  }
  0x39   : > { %1589 = vsyncadd (%p1698_p4), %s308_s1, 4294966272 }
  0x3a   : > { %1591 = dma.done.wait (%p46_p1), [#allocation6], 2048  }
  0x3b   : > { %1593 = vsyncadd (%p46_p1), [#allocation6], 4294965248 }
  0x3c   : > { %1595 = dma.done.wait (%p46_p1), [#allocation9], 2064  }
  0x3d   : > { %1597 = vsyncadd (%p46_p1), [#allocation9], 4294965232  ;;  %v1270_v0 = vld [vmem:[#allocation5 + $0x38] sm:$0xff]  ;;  %v1269_v1 = vld [vmem:[#allocation5 + $0x30] sm:$0xff]  ;;  %s1087_s29 = sshll.u32 %s1791_s16, 8  ;;  %s1296_s14 = sshll.u32 %s1689_s28, 8 }
  0x3e   : > { %497 = vmatpush.bf16.msra.mxu0 %v1270_v0  ;;  %v1268_v2 = vld [vmem:[#allocation5 + $0x28] sm:$0xff]  ;;  %v1267_v3 = vld [vmem:[#allocation5 + $0x20] sm:$0xff]  ;;  %v1266_v4 = vld [vmem:[#allocation5 + $0x18] sm:$0xff]  ;;  %s1866_s10 = scalar_lea.vmem [#allocation11], %s1087_s29  ;;  %s956_s11 = scalar_lea.hbm %s1971_s7, %s1296_s14 }
  0x3f   : > { %v1265_v5 = vld [vmem:[#allocation5 + $0x10] sm:$0xff]  ;;  %v1264_v6 = vld [vmem:[#allocation5 + $0x8] sm:$0xff]  ;;  %v1263_v7 = vld [vmem:[#allocation5] sm:$0xff]  ;;  %s957_s21 = sshll.u32 %s1866_s10, 4  ;;  %s959_s20 = sshll.u32 %s956_s11, 4  ;;  %s958_s21 = int_to_ptr.vmem [resolvable:$true] %s957_s21  ;;  %s960_s20 = int_to_ptr.hbm [resolvable:$true] %s959_s20 }
  0x40   : > { %v1255_v8 = vld [vmem:[%s1795_s15] sm:$0xff]  ;;  %v1256_v9 = vld [vmem:[%s1795_s15 + $0x8] sm:$0xff]  ;;  %v1257_v10 = vld [vmem:[%s1795_s15 + $0x10] sm:$0xff]  ;;  %s944_s28 = scalar_lea.sflag [#allocation4], %s1791_s16  ;;  %s1556_s1 = sshra.s32 %s960_s20, 4  ;;  %s1557_s1 = int_to_ptr.hbm [resolvable:$true] %s1556_s1 }
  0x41   : > { %v1258_v11 = vld [vmem:[%s1795_s15 + $0x18] sm:$0xff]  ;;  %v1259_v12 = vld [vmem:[%s1795_s15 + $0x20] sm:$0xff]  ;;  %v1260_v14 = vld [vmem:[%s1795_s15 + $0x28] sm:$0xff]  ;;  %s1562_s19 = scalar_lea.hbm %s1971_s7, 512  ;;  %p1563_p11 = scmp.lt.s32.totalorder %s1557_s1, %s1971_s7 }
  0x42   : > { %498 = vmatpush.bf16.msra.mxu0 %v1269_v1  ;;  %v1278_v13 = vld [vmem:[#allocation7 + $0x38] sm:$0xff]  ;;  %v1277_v15 = vld [vmem:[#allocation7 + $0x30] sm:$0xff]  ;;  %v1276_v16 = vld [vmem:[#allocation7 + $0x28] sm:$0xff] }
  0x43   : > { %638 = vmatpush.bf16.msra.mxu1 %v1278_v13  ;;  %v1275_v17 = vld [vmem:[#allocation7 + $0x20] sm:$0xff]  ;;  %v1274_v18 = vld [vmem:[#allocation7 + $0x18] sm:$0xff]  ;;  %v1261_v19 = vld [vmem:[%s1795_s15 + $0x30] sm:$0xff] }
  0x44   : > { %v1273_v20 = vld [vmem:[#allocation7 + $0x10] sm:$0xff]  ;;  %v1272_v21 = vld [vmem:[#allocation7 + $0x8] sm:$0xff]  ;;  %v1271_v22 = vld [vmem:[#allocation7] sm:$0xff] }
  0x45   : > { %v1262_v23 = vld [vmem:[%s1795_s15 + $0x38] sm:$0xff]  ;;  %v1820_v25 = vld [vmem:[%s1966_s2] ss:$0 sm:$0xff]  ;;  %v1242_v0 = vld [vmem:[#allocation10 + $0x70] sm:$0xf]  ;;  %s1558_s15 = scalar_lea.hbm %s1557_s1, 256 }
  0x46   : > { %499 = vmatpush.bf16.msra.mxu0 %v1268_v2  ;;  %v1294_v1 = vld [vmem:[#allocation10 + $0x74] sm:$0xf0]  ;;  %v1293_v2 = vld [vmem:[#allocation10 + $0x74] sm:$0xf]  ;;  %v1236_v13 = vld [vmem:[#allocation10 + $0x68] sm:$0xf0]  ;;  %p1559_p1 = scmp.ne.s32.totalorder %s1557_s1, %s1558_s15  ;;  %p1564_p9 = scmp.lt.s32.totalorder %s1562_s19, %s1558_s15 }
  0x47   : > { %639 = vmatpush.bf16.msra.mxu1 %v1277_v15  ;;  %v1226_v15 = vld [vmem:[#allocation10 + $0x50] sm:$0xf] }
  0x48   : > { %p1560_p4 = pnand %p1559_p1, %p1761_p5  ;;  %p1565_p2 = por %p1564_p9, %p1563_p11 }
  0x4a   : > { %500 = vmatpush.bf16.msra.mxu0 %v1267_v3  ;;  %v1243_v3 = vor.u32 %v1294_v1, %v1242_v0  ;;  %p1561_p8 = pneg %p1560_p4 }
  0x4b   : > { %640 = vmatpush.bf16.msra.mxu1 %v1276_v16  ;;  %v1290_v16 = vld [vmem:[#allocation10 + $0x54] sm:$0xf0] }
  0x4c   : > { %813 = vmatpush.bf16.msra.mxu2 %v1243_v3  ;;  %v1838_v3 = vld [vmem:[#allocation8] ss:$0 sm:$0xff]  ;;  %p1566_p10 = pnand %p1565_p2, %p1561_p8 }
  0x4e   : > { %501 = vmatpush.bf16.msra.mxu0 %v1266_v4  ;;  %v1244_v4 = vld [vmem:[#allocation10 + $0x78] sm:$0xf0] }
  0x4f   : > { %641 = vmatpush.bf16.msra.mxu1 %v1275_v17  ;;  %v1289_v17 = vld [vmem:[#allocation10 + $0x54] sm:$0xf] }
  0x52   : > { %502 = vmatpush.bf16.msra.mxu0 %v1265_v5 }
  0x53   : > { %642 = vmatpush.bf16.msra.mxu1 %v1274_v18 }
  0x56   : > { %503 = vmatpush.bf16.msra.mxu0 %v1264_v6 }
  0x57   : > { %643 = vmatpush.bf16.msra.mxu1 %v1273_v20  ;;  %v1228_v20 = vld [vmem:[#allocation10 + $0x58] sm:$0xf0] }
  0x5a   : > { %504 = vmatpush.bf16.msra.mxu0 %v1263_v7  ;;  %v1247_v7 = vor.u32 %v1293_v2, %v1244_v4 }
  0x5b   : > { %644 = vmatpush.bf16.msra.mxu1 %v1272_v21  ;;  %v1231_v21 = vor.u32 %v1289_v17, %v1228_v20 }
  0x5c   : > { %862 = vmatpush.bf16.msra.mxu3 %v1247_v7 }
  0x5d   : > { %505 = vmatmul.bf16.vlgmr.msra.gmra.mxu0 %v1255_v8 }
  0x5f   : > { %645 = vmatpush.bf16.msra.mxu1 %v1271_v22  ;;  %v1218_v22 = vld [vmem:[#allocation10 + $0x40] sm:$0xf] }
  0x6d   : > { %510 = vmatmul.bf16.gmra.mxu0 %v1256_v9  ;;  %v1234_v9 = vld [vmem:[#allocation10 + $0x60] sm:$0xf] }
  0x7d   : > { %515 = vmatmul.bf16.gmra.mxu0 %v1257_v10  ;;  %v1292_v10 = vld [vmem:[#allocation10 + $0x64] sm:$0xf0] }
  0x8d   : > { %520 = vmatmul.bf16.gmra.mxu0 %v1258_v11  ;;  %v1291_v11 = vld [vmem:[#allocation10 + $0x64] sm:$0xf] }
  0x9d   : > { %525 = vmatmul.bf16.gmra.mxu0 %v1259_v12  ;;  %v1235_v12 = vor.u32 %v1292_v10, %v1234_v9 }
  0x9f   : > { %814 = vmatpush.bf16.msra.mxu2 %v1235_v12 }
  0xad   : > { %530 = vmatmul.bf16.gmra.mxu0 %v1260_v14  ;;  %v1239_v14 = vor.u32 %v1291_v11, %v1236_v13 }
  0xaf   : > { %863 = vmatpush.bf16.msra.mxu3 %v1239_v14 }
  0xb3   : > { %864 = vmatpush.bf16.msra.mxu3 %v1231_v21 }
  0xbd   : > { %535 = vmatmul.bf16.gmra.mxu0 %v1261_v19  ;;  %v1227_v19 = vor.u32 %v1290_v16, %v1226_v15 }
  0xbf   : > { %815 = vmatpush.bf16.msra.mxu2 %v1227_v19 }
  0xcd   : > { %540 = vmatmul.bf16.gmra.mxu0 %v1262_v23  ;;  %v1288_v23 = vld [vmem:[#allocation10 + $0x44] sm:$0xf0] }
  0xda   : > { %v506_v24 = vpop.f32.mrf.mxu0 }
  0xdb   : > { %v507_v26 = vadd.f32 %v1820_v25, %v506_v24  ;;  %v1287_v24 = vld [vmem:[#allocation10 + $0x44] sm:$0xf] }
  0xdd   : > { %v546_v29 = vmax.f32 %v507_v26, 0.0  ;;  %v1220_v26 = vld [vmem:[#allocation10 + $0x48] sm:$0xf0] }
  0xe2   : > { %v508_v27 = vpop.f32.mrf.mxu0 }
  0xe3   : > { %v509_v28 = vadd.f32 %v1820_v25, %v508_v27  ;;  %v1219_v27 = vor.u32 %v1288_v23, %v1218_v22 }
  0xe5   : > { %v547_v30 = vmax.f32 %v509_v28, 0.0  ;;  %v1223_v28 = vor.u32 %v1287_v24, %v1220_v26  ;;  %816 = vmatpush.bf16.msra.mxu2 %v1219_v27 }
  0xe7   : > { %v562_v31 = vpack.c.bf16 %v547_v30, %v546_v29  ;;  %865 = vmatpush.bf16.msra.mxu3 %v1223_v28 }
  0xe9   : > { %646 = vmatmul.bf16.vlgmr.msra.gmra.mxu1 %v562_v31 }
  0xea   : > { %v511_v32 = vpop.f32.mrf.mxu0 }
  0xeb   : > { %v512_v33 = vadd.f32 %v1820_v25, %v511_v32  ;;  %v1210_v32 = vld [vmem:[#allocation10 + $0x30] sm:$0xf] }
  0xed   : > { %v548_v36 = vmax.f32 %v512_v33, 0.0  ;;  %v1286_v33 = vld [vmem:[#allocation10 + $0x34] sm:$0xf0] }
  0xf2   : > { %v513_v34 = vpop.f32.mrf.mxu0 }
  0xf3   : > { %v514_v35 = vadd.f32 %v1820_v25, %v513_v34  ;;  %v1285_v34 = vld [vmem:[#allocation10 + $0x34] sm:$0xf] }
  0xf5   : > { %v549_v37 = vmax.f32 %v514_v35, 0.0  ;;  %v1211_v35 = vor.u32 %v1286_v33, %v1210_v32 }
  0xf7   : > { %v563_v38 = vpack.c.bf16 %v549_v37, %v548_v36  ;;  %v1212_v36 = vld [vmem:[#allocation10 + $0x38] sm:$0xf0]  ;;  %817 = vmatpush.bf16.msra.mxu2 %v1211_v35 }
  0xf9   : > { %651 = vmatmul.bf16.gmra.mxu1 %v563_v38 }
  0xfa   : > { %v516_v39 = vpop.f32.mrf.mxu0 }
  0xfb   : > { %v517_v40 = vadd.f32 %v1820_v25, %v516_v39  ;;  %v1215_v39 = vor.u32 %v1285_v34, %v1212_v36 }
  0xfd   : > { %v550_v43 = vmax.f32 %v517_v40, 0.0  ;;  %866 = vmatpush.bf16.msra.mxu3 %v1215_v39 }
 0x102   : > { %v518_v41 = vpop.f32.mrf.mxu0 }
 0x103   : > { %v519_v42 = vadd.f32 %v1820_v25, %v518_v41  ;;  %v1202_v41 = vld [vmem:[#allocation10 + $0x20] sm:$0xf] }
 0x105   : > { %v551_v44 = vmax.f32 %v519_v42, 0.0  ;;  %v1284_v42 = vld [vmem:[#allocation10 + $0x24] sm:$0xf0] }
 0x107   : > { %v564_v45 = vpack.c.bf16 %v551_v44, %v550_v43  ;;  %v1283_v43 = vld [vmem:[#allocation10 + $0x24] sm:$0xf]  ;;  %v1203_v44 = vor.u32 %v1284_v42, %v1202_v41 }
 0x109   : > { %656 = vmatmul.bf16.gmra.mxu1 %v564_v45  ;;  %v1204_v45 = vld [vmem:[#allocation10 + $0x28] sm:$0xf0]  ;;  %818 = vmatpush.bf16.msra.mxu2 %v1203_v44 }
 0x10a   : > { %v521_v46 = vpop.f32.mrf.mxu0 }
 0x10b   : > { %v522_v47 = vadd.f32 %v1820_v25, %v521_v46  ;;  %v1207_v46 = vor.u32 %v1283_v43, %v1204_v45 }
 0x10d   : > { %v552_v50 = vmax.f32 %v522_v47, 0.0  ;;  %867 = vmatpush.bf16.msra.mxu3 %v1207_v46 }
 0x112   : > { %v523_v48 = vpop.f32.mrf.mxu0 }
 0x113   : > { %v524_v49 = vadd.f32 %v1820_v25, %v523_v48  ;;  %v1194_v48 = vld [vmem:[#allocation10 + $0x10] sm:$0xf] }
 0x115   : > { %v553_v51 = vmax.f32 %v524_v49, 0.0  ;;  %v1282_v49 = vld [vmem:[#allocation10 + $0x14] sm:$0xf0] }
 0x117   : > { %v565_v52 = vpack.c.bf16 %v553_v51, %v552_v50  ;;  %v1281_v50 = vld [vmem:[#allocation10 + $0x14] sm:$0xf]  ;;  %v1195_v51 = vor.u32 %v1282_v49, %v1194_v48 }
 0x119   : > { %661 = vmatmul.bf16.gmra.mxu1 %v565_v52  ;;  %v1196_v52 = vld [vmem:[#allocation10 + $0x18] sm:$0xf0]  ;;  %819 = vmatpush.bf16.msra.mxu2 %v1195_v51 }
 0x11a   : > { %v526_v53 = vpop.f32.mrf.mxu0 }
 0x11b   : > { %v527_v54 = vadd.f32 %v1820_v25, %v526_v53  ;;  %v1199_v53 = vor.u32 %v1281_v50, %v1196_v52 }
 0x11d   : > { %v554_v57 = vmax.f32 %v527_v54, 0.0  ;;  %868 = vmatpush.bf16.msra.mxu3 %v1199_v53  ;;  %v1186_v54 = vld [vmem:[#allocation10] sm:$0xf] }
 0x122   : > { %v528_v55 = vpop.f32.mrf.mxu0 }
 0x123   : > { %v529_v56 = vadd.f32 %v1820_v25, %v528_v55  ;;  %v1280_v55 = vld [vmem:[#allocation10 + $0x4] sm:$0xf0] }
 0x125   : > { %v555_v58 = vmax.f32 %v529_v56, 0.0  ;;  %v1279_v56 = vld [vmem:[#allocation10 + $0x4] sm:$0xf] }
 0x127   : > { %v566_v59 = vpack.c.bf16 %v555_v58, %v554_v57  ;;  %v1187_v57 = vor.u32 %v1280_v55, %v1186_v54  ;;  %v1188_v58 = vld [vmem:[#allocation10 + $0x8] sm:$0xf0] }
 0x129   : > { %666 = vmatmul.bf16.gmra.mxu1 %v566_v59  ;;  %820 = vmatpush.bf16.msra.mxu2 %v1187_v57 }
 0x12a   : > { %v531_v60 = vpop.f32.mrf.mxu0 }
 0x12b   : > { %v532_v61 = vadd.f32 %v1820_v25, %v531_v60  ;;  %v1191_v60 = vor.u32 %v1279_v56, %v1188_v58 }
 0x12d   : > { %v556_v5 = vmax.f32 %v532_v61, 0.0  ;;  %869 = vmatpush.bf16.msra.mxu3 %v1191_v60 }
 0x132   : > { %v533_v62 = vpop.f32.mrf.mxu0 }
 0x133   : > { %v534_v63 = vadd.f32 %v1820_v25, %v533_v62 }
 0x135   : > { %v557_v6 = vmax.f32 %v534_v63, 0.0 }
 0x137   : > { %v567_v8 = vpack.c.bf16 %v557_v6, %v556_v5 }
 0x139   : > { %671 = vmatmul.bf16.gmra.mxu1 %v567_v8 }
 0x13a   : > { %v536_v18 = vpop.f32.mrf.mxu0 }
 0x13b   : > { %v537_v29 = vadd.f32 %v1820_v25, %v536_v18 }
 0x13d   : > { %v558_v37 = vmax.f32 %v537_v29, 0.0 }
 0x142   : > { %v538_v30 = vpop.f32.mrf.mxu0 }
 0x143   : > { %v539_v31 = vadd.f32 %v1820_v25, %v538_v30 }
 0x145   : > { %v559_v38 = vmax.f32 %v539_v31, 0.0 }
 0x147   : > { %v568_v40 = vpack.c.bf16 %v559_v38, %v558_v37 }
 0x149   : > { %676 = vmatmul.bf16.gmra.mxu1 %v568_v40 }
 0x14a   : > { %v541_v47 = vpop.f32.mrf.mxu0 }
 0x14b   : > { %v542_v59 = vadd.f32 %v1820_v25, %v541_v47 }
 0x14d   : > { %v560_v63 = vmax.f32 %v542_v59, 0.0  ;;  %v727_v59 = vld [vmem:[%s1970_s6] sm:$0x3] }
 0x14e   : > { %v1860_v60 = vperm.slane %v727_v59, 0 }
 0x152   : > { %v543_v61 = vpop.f32.mrf.mxu0 }
 0x153   : > { %v544_v62 = vadd.f32 %v1820_v25, %v543_v61  ;;  %v1862_v61 = vperm.slane %v727_v59, 1 }
 0x155   : > { %v561_v0 = vmax.f32 %v544_v62, 0.0 }
 0x157   : > { %v569_v1 = vpack.c.bf16 %v561_v0, %v560_v63 }
 0x159   : > { %681 = vmatmul.bf16.gmra.mxu1 %v569_v1 }
 0x166   : > { %v647_v2 = vpop.f32.mrf.mxu1 }
 0x167   : > { %v648_v4 = vadd.f32 %v1838_v3, %v647_v2 }
 0x169   : > { %v687_v7 = vmax.f32 %v648_v4, 0.0 }
 0x16e   : > { %v649_v5 = vpop.f32.mrf.mxu1 }
 0x16f   : > { %v650_v6 = vadd.f32 %v1838_v3, %v649_v5 }
 0x171   : > { %v688_v8 = vmax.f32 %v650_v6, 0.0 }
 0x173   : > { %v703_v9 = vpack.c.bf16 %v688_v8, %v687_v7 }
 0x175   : > { %821 = vmatmul.bf16.vlgmr.msra.gmra.mxu2 %v703_v9  ;;  %870 = vmatmul.bf16.vlgmr.msra.gmra.mxu3 %v703_v9 }
 0x176   : > { %v652_v10 = vpop.f32.mrf.mxu1 }
 0x177   : > { %v653_v25 = vadd.f32 %v1838_v3, %v652_v10 }
 0x179   : > { %v689_v13 = vmax.f32 %v653_v25, 0.0 }
 0x17e   : > { %v654_v11 = vpop.f32.mrf.mxu1 }
 0x17f   : > { %v655_v12 = vadd.f32 %v1838_v3, %v654_v11 }
 0x181   : > { %v690_v14 = vmax.f32 %v655_v12, 0.0 }
 0x183   : > { %v704_v15 = vpack.c.bf16 %v690_v14, %v689_v13 }
 0x185   : > { %826 = vmatmul.bf16.gmra.mxu2 %v704_v15  ;;  %875 = vmatmul.bf16.gmra.mxu3 %v704_v15 }
 0x186   : > { %v657_v16 = vpop.f32.mrf.mxu1 }
 0x187   : > { %v658_v17 = vadd.f32 %v1838_v3, %v657_v16 }
 0x189   : > { %v691_v20 = vmax.f32 %v658_v17, 0.0 }
 0x18e   : > { %v659_v18 = vpop.f32.mrf.mxu1 }
 0x18f   : > { %v660_v19 = vadd.f32 %v1838_v3, %v659_v18 }
 0x191   : > { %v692_v21 = vmax.f32 %v660_v19, 0.0 }
 0x193   : > { %v705_v22 = vpack.c.bf16 %v692_v21, %v691_v20 }
 0x195   : > { %831 = vmatmul.bf16.gmra.mxu2 %v705_v22  ;;  %880 = vmatmul.bf16.gmra.mxu3 %v705_v22 }
 0x196   : > { %v662_v23 = vpop.f32.mrf.mxu1 }
 0x197   : > { %v663_v24 = vadd.f32 %v1838_v3, %v662_v23 }
 0x199   : > { %v693_v28 = vmax.f32 %v663_v24, 0.0 }
 0x19e   : > { %v664_v26 = vpop.f32.mrf.mxu1 }
 0x19f   : > { %v665_v27 = vadd.f32 %v1838_v3, %v664_v26 }
 0x1a1   : > { %v694_v29 = vmax.f32 %v665_v27, 0.0 }
 0x1a3   : > { %v706_v30 = vpack.c.bf16 %v694_v29, %v693_v28 }
 0x1a5   : > { %836 = vmatmul.bf16.gmra.mxu2 %v706_v30  ;;  %885 = vmatmul.bf16.gmra.mxu3 %v706_v30 }
 0x1a6   : > { %v667_v31 = vpop.f32.mrf.mxu1 }
 0x1a7   : > { %v668_v32 = vadd.f32 %v1838_v3, %v667_v31 }
 0x1a9   : > { %v695_v35 = vmax.f32 %v668_v32, 0.0 }
 0x1ae   : > { %v669_v33 = vpop.f32.mrf.mxu1 }
 0x1af   : > { %v670_v34 = vadd.f32 %v1838_v3, %v669_v33 }
 0x1b1   : > { %v696_v36 = vmax.f32 %v670_v34, 0.0 }
 0x1b3   : > { %v707_v37 = vpack.c.bf16 %v696_v36, %v695_v35 }
 0x1b5   : > { %841 = vmatmul.bf16.gmra.mxu2 %v707_v37  ;;  %890 = vmatmul.bf16.gmra.mxu3 %v707_v37 }
 0x1b6   : > { %v672_v38 = vpop.f32.mrf.mxu1 }
 0x1b7   : > { %v673_v39 = vadd.f32 %v1838_v3, %v672_v38 }
 0x1b9   : > { %v697_v42 = vmax.f32 %v673_v39, 0.0 }
 0x1be   : > { %v674_v40 = vpop.f32.mrf.mxu1 }
 0x1bf   : > { %v675_v41 = vadd.f32 %v1838_v3, %v674_v40 }
 0x1c1   : > { %v698_v43 = vmax.f32 %v675_v41, 0.0 }
 0x1c3   : > { %v708_v44 = vpack.c.bf16 %v698_v43, %v697_v42 }
 0x1c5   : > { %846 = vmatmul.bf16.gmra.mxu2 %v708_v44  ;;  %895 = vmatmul.bf16.gmra.mxu3 %v708_v44 }
 0x1c6   : > { %v677_v45 = vpop.f32.mrf.mxu1 }
 0x1c7   : > { %v678_v46 = vadd.f32 %v1838_v3, %v677_v45 }
 0x1c9   : > { %v699_v49 = vmax.f32 %v678_v46, 0.0 }
 0x1ce   : > { %v679_v47 = vpop.f32.mrf.mxu1 }
 0x1cf   : > { %v680_v48 = vadd.f32 %v1838_v3, %v679_v47 }
 0x1d1   : > { %v700_v50 = vmax.f32 %v680_v48, 0.0 }
 0x1d3   : > { %v709_v51 = vpack.c.bf16 %v700_v50, %v699_v49 }
 0x1d5   : > { %851 = vmatmul.bf16.gmra.mxu2 %v709_v51  ;;  %900 = vmatmul.bf16.gmra.mxu3 %v709_v51 }
 0x1d6   : > { %v682_v52 = vpop.f32.mrf.mxu1 }
 0x1d7   : > { %v683_v53 = vadd.f32 %v1838_v3, %v682_v52 }
 0x1d9   : > { %v701_v56 = vmax.f32 %v683_v53, 0.0 }
 0x1de   : > { %v684_v54 = vpop.f32.mrf.mxu1 }
 0x1df   : > { %v685_v55 = vadd.f32 %v1838_v3, %v684_v54 }
 0x1e1   : > { %v702_v57 = vmax.f32 %v685_v55, 0.0 }
 0x1e3   : > { %v710_v58 = vpack.c.bf16 %v702_v57, %v701_v56 }
 0x1e5   : > { %856 = vmatmul.bf16.gmra.mxu2 %v710_v58  ;;  %905 = vmatmul.bf16.gmra.mxu3 %v710_v58 }
 0x1f8   : > { %v822_v62 = vpop.f32.mrf.mxu2  ;;  %v871_v63 = vpop.f32.mrf.mxu3 }
 0x1f9   : > { %v823_v0 = vadd.f32 %v822_v62, %v1860_v60  ;;  %v872_v1 = vadd.f32 %v871_v63, %v1862_v61 }
 0x1fb   : > { %911 = vst [vmem:[%s1866_s10] sm:$0xff] %v823_v0 }
 0x1fc   : > { %912 = vst [vmem:[%s1866_s10 + $0x8] sm:$0xff] %v872_v1 }
 0x200   : > { %v824_v2 = vpop.f32.mrf.mxu2  ;;  %v873_v3 = vpop.f32.mrf.mxu3 }
 0x201   : > { %v825_v4 = vadd.f32 %v824_v2, %v1860_v60  ;;  %v874_v5 = vadd.f32 %v873_v3, %v1862_v61 }
 0x203   : > { %913 = vst [vmem:[%s1866_s10 + $0x10] sm:$0xff] %v825_v4 }
 0x204   : > { %914 = vst [vmem:[%s1866_s10 + $0x18] sm:$0xff] %v874_v5 }
 0x208   : > { %v827_v6 = vpop.f32.mrf.mxu2  ;;  %v876_v7 = vpop.f32.mrf.mxu3 }
 0x209   : > { %v828_v8 = vadd.f32 %v827_v6, %v1860_v60  ;;  %v877_v9 = vadd.f32 %v876_v7, %v1862_v61 }
 0x20b   : > { %915 = vst [vmem:[%s1866_s10 + $0x20] sm:$0xff] %v828_v8 }
 0x20c   : > { %916 = vst [vmem:[%s1866_s10 + $0x28] sm:$0xff] %v877_v9 }
 0x210   : > { %v829_v10 = vpop.f32.mrf.mxu2  ;;  %v878_v25 = vpop.f32.mrf.mxu3 }
 0x211   : > { %v830_v11 = vadd.f32 %v829_v10, %v1860_v60  ;;  %v879_v12 = vadd.f32 %v878_v25, %v1862_v61 }
 0x213   : > { %917 = vst [vmem:[%s1866_s10 + $0x30] sm:$0xff] %v830_v11 }
 0x214   : > { %918 = vst [vmem:[%s1866_s10 + $0x38] sm:$0xff] %v879_v12 }
 0x218   : > { %v832_v13 = vpop.f32.mrf.mxu2  ;;  %v881_v14 = vpop.f32.mrf.mxu3 }
 0x219   : > { %v833_v15 = vadd.f32 %v832_v13, %v1860_v60  ;;  %v882_v16 = vadd.f32 %v881_v14, %v1862_v61 }
 0x21b   : > { %919 = vst [vmem:[%s1866_s10 + $0x40] sm:$0xff] %v833_v15 }
 0x21c   : > { %920 = vst [vmem:[%s1866_s10 + $0x48] sm:$0xff] %v882_v16 }
 0x220   : > { %v834_v17 = vpop.f32.mrf.mxu2  ;;  %v883_v18 = vpop.f32.mrf.mxu3 }
 0x221   : > { %v835_v19 = vadd.f32 %v834_v17, %v1860_v60  ;;  %v884_v20 = vadd.f32 %v883_v18, %v1862_v61 }
 0x223   : > { %921 = vst [vmem:[%s1866_s10 + $0x50] sm:$0xff] %v835_v19 }
 0x224   : > { %922 = vst [vmem:[%s1866_s10 + $0x58] sm:$0xff] %v884_v20 }
 0x228   : > { %v837_v21 = vpop.f32.mrf.mxu2  ;;  %v886_v22 = vpop.f32.mrf.mxu3 }
 0x229   : > { %v838_v23 = vadd.f32 %v837_v21, %v1860_v60  ;;  %v887_v24 = vadd.f32 %v886_v22, %v1862_v61 }
 0x22b   : > { %923 = vst [vmem:[%s1866_s10 + $0x60] sm:$0xff] %v838_v23 }
 0x22c   : > { %924 = vst [vmem:[%s1866_s10 + $0x68] sm:$0xff] %v887_v24 }
 0x230   : > { %v839_v26 = vpop.f32.mrf.mxu2  ;;  %v888_v27 = vpop.f32.mrf.mxu3 }
 0x231   : > { %v840_v28 = vadd.f32 %v839_v26, %v1860_v60  ;;  %v889_v29 = vadd.f32 %v888_v27, %v1862_v61 }
 0x233   : > { %925 = vst [vmem:[%s1866_s10 + $0x70] sm:$0xff] %v840_v28 }
 0x234   : > { %926 = vst [vmem:[%s1866_s10 + $0x78] sm:$0xff] %v889_v29 }
 0x238   : > { %v842_v30 = vpop.f32.mrf.mxu2  ;;  %v891_v31 = vpop.f32.mrf.mxu3 }
 0x239   : > { %v843_v32 = vadd.f32 %v842_v30, %v1860_v60  ;;  %v892_v33 = vadd.f32 %v891_v31, %v1862_v61 }
 0x23b   : > { %927 = vst [vmem:[%s1866_s10 + $0x80] sm:$0xff] %v843_v32 }
 0x23c   : > { %928 = vst [vmem:[%s1866_s10 + $0x88] sm:$0xff] %v892_v33 }
 0x240   : > { %v844_v34 = vpop.f32.mrf.mxu2  ;;  %v893_v35 = vpop.f32.mrf.mxu3 }
 0x241   : > { %v845_v36 = vadd.f32 %v844_v34, %v1860_v60  ;;  %v894_v37 = vadd.f32 %v893_v35, %v1862_v61 }
 0x243   : > { %929 = vst [vmem:[%s1866_s10 + $0x90] sm:$0xff] %v845_v36 }
 0x244   : > { %930 = vst [vmem:[%s1866_s10 + $0x98] sm:$0xff] %v894_v37 }
 0x248   : > { %v847_v38 = vpop.f32.mrf.mxu2  ;;  %v896_v39 = vpop.f32.mrf.mxu3 }
 0x249   : > { %v848_v40 = vadd.f32 %v847_v38, %v1860_v60  ;;  %v897_v41 = vadd.f32 %v896_v39, %v1862_v61 }
 0x24b   : > { %931 = vst [vmem:[%s1866_s10 + $0xa0] sm:$0xff] %v848_v40 }
 0x24c   : > { %932 = vst [vmem:[%s1866_s10 + $0xa8] sm:$0xff] %v897_v41 }
 0x250   : > { %v849_v42 = vpop.f32.mrf.mxu2  ;;  %v898_v43 = vpop.f32.mrf.mxu3 }
 0x251   : > { %v850_v44 = vadd.f32 %v849_v42, %v1860_v60  ;;  %v899_v45 = vadd.f32 %v898_v43, %v1862_v61 }
 0x253   : > { %933 = vst [vmem:[%s1866_s10 + $0xb0] sm:$0xff] %v850_v44 }
 0x254   : > { %934 = vst [vmem:[%s1866_s10 + $0xb8] sm:$0xff] %v899_v45 }
 0x258   : > { %v852_v46 = vpop.f32.mrf.mxu2  ;;  %v901_v47 = vpop.f32.mrf.mxu3 }
 0x259   : > { %v853_v48 = vadd.f32 %v852_v46, %v1860_v60  ;;  %v902_v49 = vadd.f32 %v901_v47, %v1862_v61 }
 0x25b   : > { %935 = vst [vmem:[%s1866_s10 + $0xc0] sm:$0xff] %v853_v48 }
 0x25c   : > { %936 = vst [vmem:[%s1866_s10 + $0xc8] sm:$0xff] %v902_v49 }
 0x260   : > { %v854_v50 = vpop.f32.mrf.mxu2  ;;  %v903_v51 = vpop.f32.mrf.mxu3 }
 0x261   : > { %v855_v52 = vadd.f32 %v854_v50, %v1860_v60  ;;  %v904_v53 = vadd.f32 %v903_v51, %v1862_v61 }
 0x263   : > { %937 = vst [vmem:[%s1866_s10 + $0xd0] sm:$0xff] %v855_v52 }
 0x264   : > { %938 = vst [vmem:[%s1866_s10 + $0xd8] sm:$0xff] %v904_v53 }
 0x268   : > { %v857_v54 = vpop.f32.mrf.mxu2  ;;  %v906_v55 = vpop.f32.mrf.mxu3 }
 0x269   : > { %v858_v56 = vadd.f32 %v857_v54, %v1860_v60  ;;  %v907_v57 = vadd.f32 %v906_v55, %v1862_v61 }
 0x26b   : > { %939 = vst [vmem:[%s1866_s10 + $0xe0] sm:$0xff] %v858_v56 }
 0x26c   : > { %940 = vst [vmem:[%s1866_s10 + $0xe8] sm:$0xff] %v907_v57 }
 0x270   : > { %v859_v58 = vpop.f32.mrf.mxu2  ;;  %v908_v59 = vpop.f32.mrf.mxu3 }
 0x271   : > { %v860_v62 = vadd.f32 %v859_v58, %v1860_v60  ;;  %v909_v63 = vadd.f32 %v908_v59, %v1862_v61 }
 0x273   : > { %941 = vst [vmem:[%s1866_s10 + $0xf0] sm:$0xff] %v860_v62 }
 0x274   : > { %942 = vst [vmem:[%s1866_s10 + $0xf8] sm:$0xff] %v909_v63 }
 0x275   : > { %1569 = shalt.err (!%p1566_p10)
}
 0x276   : > { %s1626_s16 = smov 256   ;;  %s1627_s10 = smov 16  }
 0x277   : > { %1315 = dma.vmem_to_hbm [thread:$0]  (%p1761_p5), %s958_s21, 4096, %s960_s20, %s944_s28, %s1626_s16, %s1626_s16, %s1627_s10  }
 0x278 PF: > { %s974_s14 = sand.u32 1, %s1604_s24   ;;  %p1984_p12 = scmp.ge.s32.totalorder %s1616_s27, 2 }
 0x279   : > { %s975_s17 = scalar_lea.sflag [#allocation4], %s974_s14 }
 0x27a   : > { %p1335_p13 = pnand %p1984_p12, %p1703_p6 }
 0x27c   : > { %p1336_p0 = pneg %p1335_p13 }
 0x27e   : > { %1599 = dma.done.wait (%p1336_p0), %s975_s17, 4096  }
 0x27f   : > { %1601 = vsyncadd (%p1336_p0), %s975_s17, 4294963200  ;;  %p22_p3 = scmp.ge.s32.totalorder %s1748_s23, 4   ;;  %s1985_s24 = smov %s1608_s25 }
 0x280   : > { %s1986_s25 = smov %s1612_s26  ;;  %s1987_s26 = smov %s1757_s13 }
 0x281   : > { %s1988_s27 = smov %s1748_s23  ;;  %24 = sbr.rel (!%p22_p3) target bundleno = 9 (0x9), region = 109 }
 0x286   :  { %981 = vsyncpa [#allocation3], 1 }
 0x287   :  { %983 = vsyncpa [#allocation3 + $0x1], 1 }
 0x288   :  { %984 = vsyncpa [#allocation6], 1 }
 0x289   :  { %985 = vsyncpa [#allocation9], 1 }
 0x28a   :  { %986 = vsyncpa [#allocation4], 1 }
 0x28b   :  { %988 = vsyncpa [#allocation4 + $0x1], 1 }

</bundles_post_ra>
